<compile_context>
chip_gen: v7x
topology: tpu7x:2x2x1
jax: 0.10.0
libtpu: 0.0.40
codegen_flags: <defaults>
</compile_context>

<pallas_src>
import math
import jax
import jax.numpy as jnp
import numpy as np
from jax.experimental import pallas as pl
from jax.experimental.pallas import tpu as pltpu

LANE = 128


def _round_up(x, m):
    return ((x + m - 1) // m) * m


# ----------------------------- module configuration -----------------------------

def _smallest_factor(c):
    for f in range(2, c + 1):
        if c % f == 0:
            return f
    return 1  # c == 1: the PyTorch shuffle loop does nothing


def basic_module_config(cin, cout, DW_size=3, stride=1, Alpha=0.34):
    if cout >= cin:
        DW_input = int(cin * Alpha)
        Conv_input = cin - DW_input
        times = math.floor(cout / cin)
        DW_output = DW_input * times
        Conv_output = cout - DW_output
        group = DW_input
    else:
        DW_output = int(cout * Alpha)
        Conv_output = cout - DW_output
        times = math.floor(cin / cout)
        DW_input = DW_output * times
        Conv_input = cin - DW_input
        group = DW_output
    identity_shortcut = (stride == 1 and cin == cout)
    return dict(cin=cin, cout=cout, stride=stride, DW_size=DW_size,
                DW_input=DW_input, DW_output=DW_output,
                Conv_input=Conv_input, Conv_output=Conv_output,
                group=group, identity_shortcut=identity_shortcut)


# ----------------------------- deterministic params ------------------------------

def init_params(key, cfg):
    ks = jax.random.split(key, 8)

    def uni(k, shape, fan_in):
        bound = 1.0 / math.sqrt(fan_in)
        return jax.random.uniform(k, shape, jnp.float32, -bound, bound)

    g = cfg['group']
    red = int(cfg['cout'] * 0.25)
    p = {}
    p['w_dw'] = uni(ks[0], (cfg['DW_output'], cfg['DW_input'] // g, 3, 3),
                    (cfg['DW_input'] // g) * 9)
    p['w_conv'] = uni(ks[1], (cfg['Conv_output'], cfg['Conv_input'], 3, 3),
                      cfg['Conv_input'] * 9)
    if not cfg['identity_shortcut']:
        p['w_sc'] = uni(ks[2], (cfg['cout'], cfg['cin'], 1, 1), cfg['cin'])
    p['w_red'] = uni(ks[3], (red, cfg['cout'], 1, 1), cfg['cout'])
    p['b_red'] = uni(ks[4], (red,), cfg['cout'])
    p['w_exp'] = uni(ks[5], (cfg['cout'], red, 1, 1), red)
    p['b_exp'] = uni(ks[6], (cfg['cout'],), red)

    # TODO(synk): train-mode BatchNorm (batch statistics) is not implemented;
    # eval-mode BN with PyTorch fresh-init stats (gamma=1, beta=0, mean=0, var=1)
    # is folded into the conv weights/biases.
    def bn(c):
        return (jnp.ones((c,), jnp.float32), jnp.zeros((c,), jnp.float32),
                jnp.zeros((c,), jnp.float32), jnp.ones((c,), jnp.float32))

    p['bn_dw'] = bn(cfg['DW_output'])
    p['bn_conv'] = bn(cfg['Conv_output'])
    if not cfg['identity_shortcut']:
        p['bn_sc'] = bn(cfg['cout'])
    return p


# ----------------------------- glue helpers --------------------------------------

def im2col_3x3(x):  # x: (N, C, H, W) -> (N, H*W, C*9)   (stride=1, pad=1)
    N, C, H, W = x.shape
    xp = jnp.pad(x, ((0, 0), (0, 0), (1, 1), (1, 1)))
    cols = []
    for kh in range(3):
        for kw in range(3):
            cols.append(xp[:, :, kh:kh + H, kw:kw + W])
    patches = jnp.stack(cols, axis=2)                 # (N, C, 9, H, W)
    patches = patches.reshape(N, C * 9, H * W)
    return patches.transpose(0, 2, 1)                 # (N, HW, C*9)


def fold_bn(w_flat_t, bn_params):
    # w_flat_t: (K, Cout); eval-mode BN folded into scale/shift
    gamma, beta, mean, var = bn_params
    scale = gamma / jnp.sqrt(var + 1e-5)
    shift = beta - mean * scale
    return w_flat_t * scale[None, :], shift


def grouped_to_dense(w, groups):
    # (Cout, Cin/groups, 3, 3) grouped conv weight -> dense (Cout, Cin, 3, 3)
    Cout, Cin_g, kh, kw = w.shape
    opg = Cout // groups
    dense = jnp.zeros((Cout, Cin_g * groups, kh, kw), w.dtype)
    for g in range(groups):
        dense = dense.at[g * opg:(g + 1) * opg,
                         g * Cin_g:(g + 1) * Cin_g].set(w[g * opg:(g + 1) * opg])
    return dense


# ----------------------------- Pallas kernel -------------------------------------

def _make_kernel(identity_shortcut):
    def body(p_ref, xf_ref, wcat_ref, bcat_ref, wsc_ref, bsc_ref,
             wred_ref, bred_ref, wexp_ref, bexp_ref, out_ref, acc_ref):
        k = pl.program_id(1)

        @pl.when(k == 0)
        def _():
            acc_ref[...] = jnp.zeros_like(acc_ref)

        # block-diagonal (DW | Conv) im2col matmul: bf16 operands, f32 accumulation
        acc_ref[...] += jnp.dot(p_ref[...], wcat_ref[...],
                                preferred_element_type=jnp.float32)

        @pl.when(k == pl.num_programs(1) - 1)
        def _():
            out2 = acc_ref[...] + bcat_ref[...]
            if identity_shortcut:
                out1 = xf_ref[...]                       # f32 identity shortcut (no matmul)
            else:
                out1 = jnp.dot(xf_ref[...], wsc_ref[...],
                               preferred_element_type=jnp.float32) + bsc_ref[...]
            h = jnp.maximum(out1 + out2, 0.0)            # ReLU(out1 + out2)

            # SqueezeExcite: AdaptiveAvgPool2d(1) == mean over spatial rows,
            # then two tiny 1-row matmuls (kept f32, latency-only).
            se = jnp.mean(h, axis=0, keepdims=True)                      # (1, Cout)
            se = jnp.maximum(jnp.dot(se, wred_ref[...],
                                     preferred_element_type=jnp.float32)
                             + bred_ref[...], 0.0)                       # reduce + ReLU
            se = jnp.dot(se, wexp_ref[...],
                         preferred_element_type=jnp.float32) + bexp_ref[...]  # expand
            gate = jnp.clip(se + 3.0, 0.0, 6.0) * (1.0 / 6.0)            # hard_sigmoid
            out_ref[...] = (h * gate).astype(out_ref.dtype)

    if identity_shortcut:
        def kernel(p_ref, xf_ref, wcat_ref, bcat_ref,
                   wred_ref, bred_ref, wexp_ref, bexp_ref, out_ref, acc_ref):
            return body(p_ref, xf_ref, wcat_ref, bcat_ref, None, None,
                        wred_ref, bred_ref, wexp_ref, bexp_ref, out_ref, acc_ref)
        return kernel
    return body


# ----------------------------- forward wrapper ------------------------------------

def basic_module_forward(x, params, cfg, *, k_tile=512):
    assert cfg['stride'] == 1, "this script implements the stride=1 path"
    N, C, H, W = x.shape
    assert C == cfg['cin']
    HW = H * W
    Cout = cfg['cout']
    identity = cfg['identity_shortcut']

    # glue: channel shuffle (exact transcription of the PyTorch reshape loop)
    f = _smallest_factor(C)
    xs = x.reshape(N, C // f, f, H, W).transpose(0, 2, 1, 3, 4).reshape(N, C, H, W)

    # glue: channel split + im2col patch matrices
    # TODO(synk): for bandwidth-bound layers, form the 9 conv taps in-kernel from a
    # halo-padded NHWC activation instead of host-side im2col (removes 9x HBM read
    # amplification); kept host-side here for a simple, robust MXU lowering.
    x_dw = xs[:, cfg['Conv_input']:, :, :]
    x_cv = xs[:, :cfg['Conv_input'], :, :]
    P = jnp.concatenate([im2col_3x3(x_dw), im2col_3x3(x_cv)], axis=-1)  # (N, HW, K)
    xflat = xs.transpose(0, 2, 3, 1).reshape(N, HW, C)                  # (N, HW, Cin)

    Kdw = cfg['DW_input'] * 9
    Kc = cfg['Conv_input'] * 9
    K = Kdw + Kc

    # lane-dense padded sizes + K tiling
    Kp = _round_up(K, LANE)
    TK = min(k_tile, Kp)            # k_tile and Kp are multiples of 128
    Kp = _round_up(Kp, TK)
    Cp = _round_up(C, LANE)
    Cop = _round_up(Cout, LANE)
    red = params['w_red'].shape[0]
    redp = _round_up(red, LANE)

    # glue: fold BN, build zero-padded block-diagonal combined weight (DW | Conv)
    # TODO(synk): the grouped DW branch is densified into Wcat (zero filled); a VPU
    # depthwise path would shrink K by DW_input*9 for layers with large DW_input.
    w_dw_t = grouped_to_dense(params['w_dw'], cfg['group']).reshape(
        cfg['DW_output'], Kdw).T
    w_cv_t = params['w_conv'].reshape(cfg['Conv_output'], Kc).T
    w_dw_t, b_dw = fold_bn(w_dw_t, params['bn_dw'])
    w_cv_t, b_cv = fold_bn(w_cv_t, params['bn_conv'])
    Wcat = jnp.zeros((Kp, Cop), jnp.float32)
    Wcat = Wcat.at[:Kdw, :cfg['DW_output']].set(w_dw_t)
    Wcat = Wcat.at[Kdw:K, cfg['DW_output']:Cout].set(w_cv_t)
    Wcat = Wcat.astype(jnp.bfloat16)
    bcat = jnp.zeros((1, Cop), jnp.float32).at[0, :Cout].set(
        jnp.concatenate([b_dw, b_cv]))

    # padded + bf16 activations (bf16 into the MXU, f32 accumulation in-kernel)
    P = jnp.pad(P, ((0, 0), (0, 0), (0, Kp - K))).astype(jnp.bfloat16)
    if identity:
        # shortcut is a plain add -> keep the activation exact in f32
        xflat_p = jnp.pad(xflat, ((0, 0), (0, 0), (0, Cp - C)))
        sc_inputs, sc_specs = [], []
        xf_bytes = 4
    else:
        xflat_p = jnp.pad(xflat, ((0, 0), (0, 0), (0, Cp - C))).astype(jnp.bfloat16)
        w_sc_t, b_sc = fold_bn(params['w_sc'].reshape(Cout, C).T, params['bn_sc'])
        Wsc = jnp.zeros((Cp, Cop), jnp.float32).at[:C, :Cout].set(
            w_sc_t).astype(jnp.bfloat16)
        bsc = jnp.zeros((1, Cop), jnp.float32).at[0, :Cout].set(b_sc)
        sc_inputs = [Wsc, bsc]
        sc_specs = [pl.BlockSpec((Cp, Cop), lambda b, k: (0, 0)),
                    pl.BlockSpec((1, Cop), lambda b, k: (0, 0))]
        xf_bytes = 2

    # SE weights (tiny, 1-row dots) kept f32 for accuracy; lane-padded.
    Wred = jnp.zeros((Cop, redp), jnp.float32).at[:Cout, :red].set(
        params['w_red'].reshape(red, Cout).T)
    bred = jnp.zeros((1, redp), jnp.float32).at[0, :red].set(params['b_red'])
    Wexp = jnp.zeros((redp, Cop), jnp.float32).at[:red, :Cout].set(
        params['w_exp'].reshape(Cout, red).T)
    bexp = jnp.zeros((1, Cop), jnp.float32).at[0, :Cout].set(params['b_exp'])

    num_k = Kp // TK

    # scoped-VMEM budget sized from actual (double-buffered) block bytes
    vmem_needed = (2 * HW * TK * 2 + 2 * TK * Cop * 2          # P tile + Wcat tile
                   + 2 * HW * Cp * xf_bytes                    # xflat block
                   + 2 * HW * Cop * 4 + HW * Cop * 4           # out block + f32 acc
                   + 2 * (Cop * 4 + Cop * redp * 4 + redp * 4
                          + redp * Cop * 4 + Cop * 4)          # biases + SE weights
                   + (0 if identity else 2 * (Cp * Cop * 2 + Cop * 4)))
    vmem_limit = int(min(64 << 20, max(32 << 20, 2 * vmem_needed)))

    full2d = lambda shape: pl.BlockSpec(shape, lambda b, k: (0, 0))
    out = pl.pallas_call(
        _make_kernel(identity),
        out_shape=jax.ShapeDtypeStruct((N, HW, Cop), jnp.float32),
        grid=(N, num_k),
        in_specs=[
            pl.BlockSpec((None, HW, TK), lambda b, k: (b, 0, k)),   # im2col patches (bf16)
            pl.BlockSpec((None, HW, Cp), lambda b, k: (b, 0, 0)),   # shuffled activation
            pl.BlockSpec((TK, Cop), lambda b, k: (k, 0)),           # combined DW|Conv weight
            full2d((1, Cop)),                                       # combined bias
            *sc_specs,                                              # shortcut weight/bias
            full2d((Cop, redp)), full2d((1, redp)),                 # SE reduce
            full2d((redp, Cop)), full2d((1, Cop)),                  # SE expand
        ],
        out_specs=pl.BlockSpec((None, HW, Cop), lambda b, k: (b, 0, 0)),
        scratch_shapes=[pltpu.VMEM((HW, Cop), jnp.float32)],        # f32 accumulator
        compiler_params=pltpu.CompilerParams(
            dimension_semantics=("parallel", "arbitrary"),
            vmem_limit_bytes=vmem_limit),
    )(P, xflat_p, Wcat, bcat, *sc_inputs, Wred, bred, Wexp, bexp)

    # glue: drop channel padding, back to NCHW
    out = out[:, :, :Cout]
    return out.reshape(N, H, W, Cout).transpose(0, 3, 1, 2)


# ----------------------------- pure-JAX reference ---------------------------------

def basic_module_reference(x, params, cfg):
    N, C, H, W = x.shape
    f = _smallest_factor(C)
    xs = x.reshape(N, C // f, f, H, W).transpose(0, 2, 1, 3, 4).reshape(N, C, H, W)
    dn = ('NCHW', 'OIHW', 'NCHW')

    def conv(inp, w, stride, pad, groups=1):
        return jax.lax.conv_general_dilated(inp, w, (stride, stride), pad,
                                            dimension_numbers=dn,
                                            feature_group_count=groups)

    def bn(y, p):
        g, b, m, v = p
        return (g[None, :, None, None] * (y - m[None, :, None, None])
                / jnp.sqrt(v[None, :, None, None] + 1e-5) + b[None, :, None, None])

    if cfg['identity_shortcut']:
        out1 = xs
    else:
        out1 = bn(conv(xs, params['w_sc'], cfg['stride'], 'VALID'), params['bn_sc'])
    x1 = bn(conv(xs[:, cfg['Conv_input']:], params['w_dw'], cfg['stride'],
                 [(1, 1), (1, 1)], cfg['group']), params['bn_dw'])
    x2 = bn(conv(xs[:, :cfg['Conv_input']], params['w_conv'], cfg['stride'],
                 [(1, 1), (1, 1)]), params['bn_conv'])
    out2 = jnp.concatenate([x1, x2], axis=1)
    h = jnp.maximum(out1 + out2, 0.0)
    se = h.mean(axis=(2, 3), keepdims=True)
    se = jnp.maximum(conv(se, params['w_red'], 1, 'VALID')
                     + params['b_red'][None, :, None, None], 0.0)
    se = conv(se, params['w_exp'], 1, 'VALID') + params['b_exp'][None, :, None, None]
    gate = jnp.clip(se + 3.0, 0.0, 6.0) / 6.0
    return h * gate


# ----------------------------- main -----------------------------------------------

if __name__ == "__main__":
    key = jax.random.PRNGKey(0)
    kx, kp = jax.random.split(key)

    # BasicModule(input=8, output=16, DW_size=3, stride=1, Alpha=0.34)
    cfg = basic_module_config(8, 16, DW_size=3, stride=1, Alpha=0.34)
    params = init_params(kp, cfg)

    x = jax.random.normal(kx, (2, 8, 8, 8), jnp.float32)   # NCHW: B=2, C=8, H=W=8

    out = basic_module_forward(x, params, cfg)
    out = jax.block_until_ready(out)
    assert out.shape == (2, 16, 8, 8), out.shape

    ref = basic_module_reference(x, params, cfg)
    # bf16 MXU operands with f32 accumulation => compare at bf16-level tolerance
    np.testing.assert_allclose(np.asarray(out), np.asarray(ref),
                               rtol=2e-2, atol=2e-2)
    print("KERNEL_OK")
</pallas_src>

<mosaic_0001>
module attributes {stable_mosaic.version = 11 : i64} {
  func.func @body(%arg0: i32, %arg1: i32, %arg2: memref<1x64x128xbf16, #tpu.memory_space<vmem>>, %arg3: memref<1x64x128xbf16, #tpu.memory_space<vmem>>, %arg4: memref<128x128xbf16, #tpu.memory_space<vmem>>, %arg5: memref<1x128xf32, #tpu.memory_space<vmem>>, %arg6: memref<128x128xbf16, #tpu.memory_space<vmem>>, %arg7: memref<1x128xf32, #tpu.memory_space<vmem>>, %arg8: memref<128x128xf32, #tpu.memory_space<vmem>>, %arg9: memref<1x128xf32, #tpu.memory_space<vmem>>, %arg10: memref<128x128xf32, #tpu.memory_space<vmem>>, %arg11: memref<1x128xf32, #tpu.memory_space<vmem>>, %arg12: memref<1x64x128xf32, #tpu.memory_space<vmem>>, %arg13: memref<64x128xf32, #tpu.memory_space<vmem>>) attributes {dimension_semantics = [#tpu.dimension_semantics<parallel>, #tpu.dimension_semantics<arbitrary>], iteration_bounds = array<i64: 2, 1>, scalar_prefetch = 0 : i64, scratch_operands = 1 : i64, tpu.core_type = #tpu.core_type<tc>, window_params = [{transform_indices = @transform_0, window_bounds = array<i64: 1, 64, 128>}, {transform_indices = @transform_1, window_bounds = array<i64: 1, 64, 128>}, {transform_indices = @transform_2, window_bounds = array<i64: 128, 128>}, {pipeline_mode = #tpu.pipeline_mode<synchronous>, transform_indices = @transform_3, window_bounds = array<i64: 1, 128>}, {pipeline_mode = #tpu.pipeline_mode<synchronous>, transform_indices = @transform_4, window_bounds = array<i64: 128, 128>}, {pipeline_mode = #tpu.pipeline_mode<synchronous>, transform_indices = @transform_5, window_bounds = array<i64: 1, 128>}, {pipeline_mode = #tpu.pipeline_mode<synchronous>, transform_indices = @transform_6, window_bounds = array<i64: 128, 128>}, {pipeline_mode = #tpu.pipeline_mode<synchronous>, transform_indices = @transform_7, window_bounds = array<i64: 1, 128>}, {pipeline_mode = #tpu.pipeline_mode<synchronous>, transform_indices = @transform_8, window_bounds = array<i64: 128, 128>}, {pipeline_mode = #tpu.pipeline_mode<synchronous>, transform_indices = @transform_9, window_bounds = array<i64: 1, 128>}, {transform_indices = @transform_10, window_bounds = array<i64: 1, 64, 128>}]} {
    %c0_i32 = arith.constant 0 : i32
    %0 = arith.cmpi eq, %arg1, %c0_i32 : i32
    %1 = arith.extui %0 : i1 to i32
    %c0_i32_0 = arith.constant 0 : i32
    %2 = arith.cmpi ne, %1, %c0_i32_0 : i32
    scf.if %2 {
      %cst_11 = arith.constant 0.000000e+00 : f32
      %13 = vector.broadcast %cst_11 : f32 to vector<64x128xf32>
      %c0_12 = arith.constant 0 : index
      %c0_13 = arith.constant 0 : index
      %14 = vector.load %arg13[%c0_12, %c0_13] : memref<64x128xf32, #tpu.memory_space<vmem>>, vector<64x128xf32>
      tpu.vector_store %arg13[%c0_12, %c0_13], %13 {strides = array<i32>} : memref<64x128xf32, #tpu.memory_space<vmem>>, vector<64x128xf32>,
    } else {
    }
    %c0 = arith.constant 0 : index
    %c0_1 = arith.constant 0 : index
    %3 = vector.load %arg13[%c0, %c0_1] : memref<64x128xf32, #tpu.memory_space<vmem>>, vector<64x128xf32>
    %c0_2 = arith.constant 0 : index
    %c0_3 = arith.constant 0 : index
    %c0_4 = arith.constant 0 : index
    %4 = vector.load %arg2[%c0_2, %c0_3, %c0_4] : memref<1x64x128xbf16, #tpu.memory_space<vmem>>, vector<1x64x128xbf16>
    %5 = vector.shape_cast %4 : vector<1x64x128xbf16> to vector<64x128xbf16>
    %c0_5 = arith.constant 0 : index
    %c0_6 = arith.constant 0 : index
    %6 = vector.load %arg4[%c0_5, %c0_6] : memref<128x128xbf16, #tpu.memory_space<vmem>>, vector<128x128xbf16>
    %cst = arith.constant dense<0.000000e+00> : vector<64x128xf32>
    %7 = tpu.matmul %5, %6, %cst {dimension_numbers = #tpu.dot_dimension_numbers<[1], [0], [0], [1], [0, 0, 1, 1], [], []>} : vector<64x128xbf16>, vector<128x128xbf16>, vector<64x128xf32> -> vector<64x128xf32>
    %8 = arith.addf %3, %7 : vector<64x128xf32>
    %c0_7 = arith.constant 0 : index
    %c0_8 = arith.constant 0 : index
    %9 = vector.load %arg13[%c0_7, %c0_8] : memref<64x128xf32, #tpu.memory_space<vmem>>, vector<64x128xf32>
    tpu.vector_store %arg13[%c0_7, %c0_8], %8 {strides = array<i32>} : memref<64x128xf32, #tpu.memory_space<vmem>>, vector<64x128xf32>,
    %c0_i32_9 = arith.constant 0 : i32
    %10 = arith.cmpi eq, %arg1, %c0_i32_9 : i32
    %11 = arith.extui %10 : i1 to i32
    %c0_i32_10 = arith.constant 0 : i32
    %12 = arith.cmpi ne, %11, %c0_i32_10 : i32
    scf.if %12 {
      %c0_11 = arith.constant 0 : index
      %c0_12 = arith.constant 0 : index
      %13 = vector.load %arg13[%c0_11, %c0_12] : memref<64x128xf32, #tpu.memory_space<vmem>>, vector<64x128xf32>
      %c0_13 = arith.constant 0 : index
      %c0_14 = arith.constant 0 : index
      %14 = vector.load %arg5[%c0_13, %c0_14] : memref<1x128xf32, #tpu.memory_space<vmem>>, vector<1x128xf32>
      %15 = vector.broadcast %14 : vector<1x128xf32> to vector<64x128xf32>
      %16 = arith.addf %13, %15 : vector<64x128xf32>
      %c0_15 = arith.constant 0 : index
      %c0_16 = arith.constant 0 : index
      %c0_17 = arith.constant 0 : index
      %17 = vector.load %arg3[%c0_15, %c0_16, %c0_17] : memref<1x64x128xbf16, #tpu.memory_space<vmem>>, vector<1x64x128xbf16>
      %18 = vector.shape_cast %17 : vector<1x64x128xbf16> to vector<64x128xbf16>
      %c0_18 = arith.constant 0 : index
      %c0_19 = arith.constant 0 : index
      %19 = vector.load %arg6[%c0_18, %c0_19] : memref<128x128xbf16, #tpu.memory_space<vmem>>, vector<128x128xbf16>
      %cst_20 = arith.constant dense<0.000000e+00> : vector<64x128xf32>
      %20 = tpu.matmul %18, %19, %cst_20 {dimension_numbers = #tpu.dot_dimension_numbers<[1], [0], [0], [1], [0, 0, 1, 1], [], []>} : vector<64x128xbf16>, vector<128x128xbf16>, vector<64x128xf32> -> vector<64x128xf32>
      %c0_21 = arith.constant 0 : index
      %c0_22 = arith.constant 0 : index
      %21 = vector.load %arg7[%c0_21, %c0_22] : memref<1x128xf32, #tpu.memory_space<vmem>>, vector<1x128xf32>
      %22 = vector.broadcast %21 : vector<1x128xf32> to vector<64x128xf32>
      %23 = arith.addf %20, %22 : vector<64x128xf32>
      %24 = arith.addf %23, %16 : vector<64x128xf32>
      %cst_23 = arith.constant 0.000000e+00 : f32
      %25 = vector.broadcast %cst_23 : f32 to vector<64x128xf32>
      %26 = arith.maximumf %24, %25 : vector<64x128xf32>
      %cst_24 = arith.constant dense<0.000000e+00> : vector<128xf32>
      %27 = vector.multi_reduction <add>, %26, %cst_24 [0] : vector<64x128xf32> to vector<128xf32>
      %28 = vector.shape_cast %27 : vector<128xf32> to vector<1x128xf32>
      %cst_25 = arith.constant 6.400000e+01 : f32
      %29 = vector.broadcast %cst_25 : f32 to vector<1x128xf32>
      %30 = arith.divf %28, %29 : vector<1x128xf32>
      %c0_26 = arith.constant 0 : index
      %c0_27 = arith.constant 0 : index
      %31 = vector.load %arg8[%c0_26, %c0_27] : memref<128x128xf32, #tpu.memory_space<vmem>>, vector<128x128xf32>
      %cst_28 = arith.constant dense<0.000000e+00> : vector<1x128xf32>
      %32 = tpu.matmul %30, %31, %cst_28 {dimension_numbers = #tpu.dot_dimension_numbers<[1], [0], [0], [1], [0, 0, 1, 1], [], []>} : vector<1x128xf32>, vector<128x128xf32>, vector<1x128xf32> -> vector<1x128xf32>
      %c0_29 = arith.constant 0 : index
      %c0_30 = arith.constant 0 : index
      %33 = vector.load %arg9[%c0_29, %c0_30] : memref<1x128xf32, #tpu.memory_space<vmem>>, vector<1x128xf32>
      %34 = arith.addf %32, %33 : vector<1x128xf32>
      %cst_31 = arith.constant 0.000000e+00 : f32
      %35 = vector.broadcast %cst_31 : f32 to vector<1x128xf32>
      %36 = arith.maximumf %34, %35 : vector<1x128xf32>
      %c0_32 = arith.constant 0 : index
      %c0_33 = arith.constant 0 : index
      %37 = vector.load %arg10[%c0_32, %c0_33] : memref<128x128xf32, #tpu.memory_space<vmem>>, vector<128x128xf32>
      %cst_34 = arith.constant dense<0.000000e+00> : vector<1x128xf32>
      %38 = tpu.matmul %36, %37, %cst_34 {dimension_numbers = #tpu.dot_dimension_numbers<[1], [0], [0], [1], [0, 0, 1, 1], [], []>} : vector<1x128xf32>, vector<128x128xf32>, vector<1x128xf32> -> vector<1x128xf32>
      %c0_35 = arith.constant 0 : index
      %c0_36 = arith.constant 0 : index
      %39 = vector.load %arg11[%c0_35, %c0_36] : memref<1x128xf32, #tpu.memory_space<vmem>>, vector<1x128xf32>
      %40 = arith.addf %38, %39 : vector<1x128xf32>
      %cst_37 = arith.constant 3.000000e+00 : f32
      %41 = vector.broadcast %cst_37 : f32 to vector<1x128xf32>
      %42 = arith.addf %40, %41 : vector<1x128xf32>
      %cst_38 = arith.constant 0.000000e+00 : f32
      %cst_39 = arith.constant 6.000000e+00 : f32
      %43 = vector.broadcast %cst_38 : f32 to vector<1x128xf32>
      %44 = arith.maximumf %43, %42 : vector<1x128xf32>
      %45 = vector.broadcast %cst_39 : f32 to vector<1x128xf32>
      %46 = arith.minimumf %45, %44 : vector<1x128xf32>
      %cst_40 = arith.constant 0.166666672 : f32
      %47 = vector.broadcast %cst_40 : f32 to vector<1x128xf32>
      %48 = arith.mulf %46, %47 : vector<1x128xf32>
      %49 = vector.broadcast %48 : vector<1x128xf32> to vector<64x128xf32>
      %50 = arith.mulf %26, %49 : vector<64x128xf32>
      %c0_41 = arith.constant 0 : index
      %c0_42 = arith.constant 0 : index
      %c0_43 = arith.constant 0 : index
      %51 = vector.load %arg12[%c0_41, %c0_42, %c0_43] : memref<1x64x128xf32, #tpu.memory_space<vmem>>, vector<1x64x128xf32>
      %52 = vector.shape_cast %51 : vector<1x64x128xf32> to vector<64x128xf32>
      %53 = vector.shape_cast %50 : vector<64x128xf32> to vector<1x64x128xf32>
      tpu.vector_store %arg12[%c0_41, %c0_42, %c0_43], %53 {strides = array<i32>} : memref<1x64x128xf32, #tpu.memory_space<vmem>>, vector<1x64x128xf32>,
    } else {
    }
    return
  }
  func.func @transform_0(%arg0: i32, %arg1: i32) -> (i32, i32, i32) {
    %c0_i32 = arith.constant 0 : i32
    %c0_i32_0 = arith.constant 0 : i32
    return %arg0, %c0_i32, %arg1 : i32, i32, i32
  }
  func.func @transform_1(%arg0: i32, %arg1: i32) -> (i32, i32, i32) {
    %c0_i32 = arith.constant 0 : i32
    %c0_i32_0 = arith.constant 0 : i32
    %c0_i32_1 = arith.constant 0 : i32
    return %arg0, %c0_i32, %c0_i32_0 : i32, i32, i32
  }
  func.func @transform_2(%arg0: i32, %arg1: i32) -> (i32, i32) {
    %c0_i32 = arith.constant 0 : i32
    %c0_i32_0 = arith.constant 0 : i32
    return %arg1, %c0_i32 : i32, i32
  }
  func.func @transform_3(%arg0: i32, %arg1: i32) -> (i32, i32) {
    %c0_i32 = arith.constant 0 : i32
    %c0_i32_0 = arith.constant 0 : i32
    %c0_i32_1 = arith.constant 0 : i32
    return %c0_i32, %c0_i32_0 : i32, i32
  }
  func.func @transform_4(%arg0: i32, %arg1: i32) -> (i32, i32) {
    %c0_i32 = arith.constant 0 : i32
    %c0_i32_0 = arith.constant 0 : i32
    %c0_i32_1 = arith.constant 0 : i32
    return %c0_i32, %c0_i32_0 : i32, i32
  }
  func.func @transform_5(%arg0: i32, %arg1: i32) -> (i32, i32) {
    %c0_i32 = arith.constant 0 : i32
    %c0_i32_0 = arith.constant 0 : i32
    %c0_i32_1 = arith.constant 0 : i32
    return %c0_i32, %c0_i32_0 : i32, i32
  }
  func.func @transform_6(%arg0: i32, %arg1: i32) -> (i32, i32) {
    %c0_i32 = arith.constant 0 : i32
    %c0_i32_0 = arith.constant 0 : i32
    %c0_i32_1 = arith.constant 0 : i32
    return %c0_i32, %c0_i32_0 : i32, i32
  }
  func.func @transform_7(%arg0: i32, %arg1: i32) -> (i32, i32) {
    %c0_i32 = arith.constant 0 : i32
    %c0_i32_0 = arith.constant 0 : i32
    %c0_i32_1 = arith.constant 0 : i32
    return %c0_i32, %c0_i32_0 : i32, i32
  }
  func.func @transform_8(%arg0: i32, %arg1: i32) -> (i32, i32) {
    %c0_i32 = arith.constant 0 : i32
    %c0_i32_0 = arith.constant 0 : i32
    %c0_i32_1 = arith.constant 0 : i32
    return %c0_i32, %c0_i32_0 : i32, i32
  }
  func.func @transform_9(%arg0: i32, %arg1: i32) -> (i32, i32) {
    %c0_i32 = arith.constant 0 : i32
    %c0_i32_0 = arith.constant 0 : i32
    %c0_i32_1 = arith.constant 0 : i32
    return %c0_i32, %c0_i32_0 : i32, i32
  }
  func.func @transform_10(%arg0: i32, %arg1: i32) -> (i32, i32, i32) {
    %c0_i32 = arith.constant 0 : i32
    %c0_i32_0 = arith.constant 0 : i32
    %c0_i32_1 = arith.constant 0 : i32
    return %arg0, %c0_i32, %c0_i32_0 : i32, i32, i32
  }
}

</mosaic_0001>

<bundles_post_ra>
// kernel: tpu_custom_call.1
= control target key start
LH: loop header
LB: loop body
LE: loop exit
PB: predicated region body
PF: predicated region fallthrough
CT: control target
= control target key end

     0   :  { %s2524_s0 = inlined_call_operand.hbm [shape: bf16[2,64,128], index: 0, kind: input, shape index: {}]   ;;  %s2525_s1 = inlined_call_operand.hbm [shape: bf16[2,64,128], index: 1, kind: input, shape index: {}]   ;;  %s2526_s2 = inlined_call_operand.hbm [shape: bf16[128,128], index: 2, kind: input, shape index: {}]   ;;  %s2527_s3 = inlined_call_operand.vmem [shape: f32[1,128], index: 3, kind: input, shape index: {}]   ;;  %s2528_s4 = inlined_call_operand.hbm [shape: bf16[128,128], index: 4, kind: input, shape index: {}]   ;;  %s2529_s5 = inlined_call_operand.vmem [shape: f32[1,128], index: 5, kind: input, shape index: {}]   ;;  %s2530_s6 = inlined_call_operand.hbm [shape: f32[128,128], index: 6, kind: input, shape index: {}]   ;;  %s2531_s7 = inlined_call_operand.vmem [shape: f32[1,128], index: 7, kind: input, shape index: {}]   ;;  %s2532_s8 = inlined_call_operand.hbm [shape: f32[128,128], index: 8, kind: input, shape index: {}]   ;;  %s2533_s9 = inlined_call_operand.vmem [shape: f32[1,128], index: 9, kind: input, shape index: {}]   ;;  %s2534_s10 = inlined_call_operand.hbm [shape: f32[2,64,128], index: 10, kind: output, shape index: {}]  }
   0x1   :  { %2545 = sst [smem:[#allocation24_spill]] %s2524_s0 }
   0x2   :  { %2546 = sst [smem:[#allocation25_spill]] %s2526_s2 }
   0x3   :  { %2547 = sst [smem:[#allocation26_spill]] %s2528_s4 }
   0x4   :  { %2548 = sst [smem:[#allocation27_spill]] %s2530_s6 }
   0x5   :  { %2549 = sst [smem:[#allocation28_spill]] %s2531_s7 }
   0x6   :  { %2550 = sst [smem:[#allocation29_spill]] %s2532_s8 }
   0x7   :  { %2551 = sst [smem:[#allocation30_spill]] %s2533_s9 }
   0x8   :  { %2552 = sst [smem:[#allocation31_spill]] %s2534_s10 }
   0x9   :  { %15 = vsyncpa [#allocation4], 0 }
   0xa   :  { %17 = vsyncpa [#allocation4 + $0x1], 0 }
   0xb   :  { %18 = vsyncpa [#allocation7], 0 }
   0xc   :  { %20 = vsyncpa [#allocation7 + $0x1], 0 }
   0xd   :  { %21 = vsyncpa [#allocation10], 0 }
   0xe   :  { %22 = vsyncpa [#allocation13], 0 }
   0xf   :  { %23 = vsyncpa [#allocation5], 0 }
  0x10   :  { %25 = vsyncpa [#allocation5 + $0x1], 0  ;;  %s2070_s13 = smov 0   ;;  %s2072_s14 = smov 0  }
  0x11   :  { %s2074_s15 = smov 0   ;;  %s2076_s16 = smov 0  }
  0x12   :  { %s2078_s17 = smov 0   ;;  %s2080_s18 = smov 0  }
  0x13 LB: > { %2553 = sst [smem:[#allocation21_spill]] %s1977_s13  ;;  %s2101_s19 = sadd.s32 4294967295, %s1997_s18   ;;  %s1997_s18 = sphi %s2080_s18, %s31_s18   ;;  %s1993_s17 = sphi %s2078_s17, %s2592_s17   ;;  %s1989_s16 = sphi %s2076_s16, %s2591_s16   ;;  %s1985_s15 = sphi %s2074_s15, %s2590_s15   ;;  %s1981_s14 = sphi %s2072_s14, %s2589_s14   ;;  %s1977_s13 = sphi %s2070_s13, %s2588_s13  }
  0x14   : > { %2554 = sst [smem:[#allocation22_spill]] %s1989_s16  ;;  %s1283_s20 = sadd.s32 4294967294, %s1997_s18  }
  0x15   : > { %p65_p0 = scmp.ne.s32.totalorder %s1981_s14, %s1977_s13  ;;  %p2537_p1 = scmp.eq.s32.totalorder %s2101_s19, 0 }
  0x16   : > { %p294_p3 = scmp.eq.s32.totalorder %s1283_s20, 1  ;;  %p1284_p5 = scmp.ge.s32.totalorder %s1997_s18, 1 }
  0x17   : > { %p2110_p4 = por %p2537_p1, %p65_p0  ;;  %p301_p7 = scmp.lt.s32.totalorder %s1997_s18, 3 }
  0x18   : > { %p2115_p6 = por %p294_p3, %p65_p0  ;;  %s1999_s24 = smov [#allocation8]  }
  0x19   : > { %s2555_s21 = scalar_select %p2110_p4, 1, 0 }
  0x1a   : > { %s2556_s22 = scalar_select %p2115_p6, 1, 0 }
  0x1b   : > { %p2120_p8 = pnand %p1284_p5, %p301_p7  ;;  %s316_s25 = sshll.u32 %s1999_s24, 4  ;;  %s2124_s25 = int_to_ptr.vmem [resolvable:$true] %s316_s25 }
  0x1c   : > { %2557 = sst [smem:[#allocation23_spill]] %s2556_s22  ;;  %s2000_s27 = smov [#allocation9]  }
  0x1d   : > { %s2558_s23 = scalar_select %p2120_p8, 1, 0 }
  0x1e   : > { %p1608_p9 = pneg %p2120_p8  ;;  %s332_s28 = sshll.u32 %s2000_s27, 4  ;;  %s2135_s28 = int_to_ptr.vmem [resolvable:$true] %s332_s28 }
  0x1f   : > { %s2001_s29 = smov [#allocation11]   ;;  %s2560_s2 = sld [smem:[#allocation25_spill]] }
  0x20   : > { %p2131_p11 = pnand %p1608_p9, %p2537_p1  ;;  %s2137_s30 = sshll.u32 %s2001_s29, 4  ;;  %s349_s30 = int_to_ptr.vmem [resolvable:$true] %s2137_s30 }
  0x22   : > { %p2147_p13 = pneg %p2131_p11 }
  0x25   : > { %s1727_s20 = scalar_lea.hbm %s2560_s2, 1024 }
  0x26   : > { %p1728_p12 = scmp.ne.s32.totalorder %s2560_s2, %s1727_s20  ;;  %p1734_p5 = scmp.lt.u32.totalorder %s1727_s20, %s2560_s2 }
  0x28   : > { %p1730_p0 = pnand %p2147_p13, %p1728_p12 }
  0x2a   : > { %p1731_p3 = pneg %p1730_p0 }
  0x2c   : > { %p1736_p7 = pnand %p1734_p5, %p1731_p3 }
  0x2e   : > { %1739 = shalt.err (!%p1736_p7)
}
  0x2f   : > { %s1740_s22 = scalar_lea.vmem %s2124_s25, 1024  ;;  %p1748_p2 = scmp.lt.s32.totalorder %s2124_s25, %s2124_s25 }
  0x30   : > { %p1741_p9 = scmp.ne.s32.totalorder %s2124_s25, %s1740_s22  ;;  %p1749_p6 = scmp.lt.s32.totalorder %s1740_s22, %s1740_s22 }
  0x32   : > { %p1743_p10 = pnand %p1741_p9, %p2147_p13  ;;  %p1750_p12 = por %p1749_p6, %p1748_p2 }
  0x34   : > { %p1744_p1 = pneg %p1743_p10 }
  0x36   : > { %p1751_p0 = pnand %p1750_p12, %p1744_p1 }
  0x38   : > { %1754 = shalt.err (!%p1751_p0)
}
  0x39   : > { %s2541_s11 = smov 64   ;;  %s2543_s12 = smov 4  }
  0x3a   : > { %1611 = dma.hbm_to_vmem [thread:$0]  (!%p2131_p11), %s2560_s2, 1024, %s2124_s25, [#allocation7], %s2541_s11, %s2541_s11, %s2543_s12  }
  0x3b   : > { %s2562_s4 = sld [smem:[#allocation26_spill]] }
  0x41   : > { %s1755_s22 = scalar_lea.hbm %s2562_s4, 1024 }
  0x42   : > { %p1756_p1 = scmp.ne.s32.totalorder %s2562_s4, %s1755_s22  ;;  %p1762_p10 = scmp.lt.u32.totalorder %s1755_s22, %s2562_s4 }
  0x44   : > { %p1758_p2 = pnand %p1756_p1, %p2147_p13 }
  0x46   : > { %p1759_p6 = pneg %p1758_p2 }
  0x48   : > { %p1764_p3 = pnand %p1762_p10, %p1759_p6 }
  0x4a   : > { %1767 = shalt.err (!%p1764_p3)
}
  0x4b   : > { %s1768_s25 = scalar_lea.vmem %s2135_s28, 1024  ;;  %p1776_p12 = scmp.lt.s32.totalorder %s2135_s28, %s2135_s28 }
  0x4c   : > { %p1769_p5 = scmp.ne.s32.totalorder %s2135_s28, %s1768_s25  ;;  %p1777_p0 = scmp.lt.s32.totalorder %s1768_s25, %s1768_s25 }
  0x4e   : > { %p1771_p7 = pnand %p1769_p5, %p2147_p13  ;;  %p1778_p1 = por %p1777_p0, %p1776_p12 }
  0x50   : > { %p1772_p9 = pneg %p1771_p7 }
  0x52   : > { %p1779_p2 = pnand %p1778_p1, %p1772_p9 }
  0x54   : > { %1782 = shalt.err (!%p1779_p2)
}
  0x55   : > { %1614 = dma.hbm_to_vmem [thread:$0]  (!%p2131_p11), %s2562_s4, 1024, %s2135_s28, [#allocation10], %s2541_s11, %s2541_s11, %s2543_s12  }
  0x56   : > { %s2563_s6 = sld [smem:[#allocation27_spill]] }
  0x5c   : > { %s1783_s20 = scalar_lea.hbm %s2563_s6, 2048 }
  0x5d   : > { %p1784_p6 = scmp.ne.s32.totalorder %s2563_s6, %s1783_s20  ;;  %p1790_p5 = scmp.lt.u32.totalorder %s1783_s20, %s2563_s6 }
  0x5f   : > { %p1786_p10 = pnand %p1784_p6, %p2147_p13 }
  0x61   : > { %p1787_p3 = pneg %p1786_p10 }
  0x63   : > { %p1792_p7 = pnand %p1790_p5, %p1787_p3 }
  0x65   : > { %1795 = shalt.err (!%p1792_p7)
}
  0x66   : > { %s1796_s25 = scalar_lea.vmem %s349_s30, 2048  ;;  %p1804_p1 = scmp.lt.s32.totalorder %s349_s30, %s349_s30 }
  0x67   : > { %p1797_p9 = scmp.ne.s32.totalorder %s349_s30, %s1796_s25  ;;  %p1805_p2 = scmp.lt.s32.totalorder %s1796_s25, %s1796_s25 }
  0x69   : > { %p1799_p12 = pnand %p1797_p9, %p2147_p13  ;;  %p1806_p4 = por %p1805_p2, %p1804_p1 }
  0x6b   : > { %p1800_p0 = pneg %p1799_p12 }
  0x6d   : > { %p1807_p8 = pnand %p1806_p4, %p1800_p0 }
  0x6f   : > { %1810 = shalt.err (!%p1807_p8)
}
  0x70   : > { %s2004_s28 = smov 128   ;;  %s2005_s7 = smov 8  }
  0x71   : > { %1617 = dma.hbm_to_vmem [thread:$0]  (!%p2131_p11), %s2563_s6, 2048, %s349_s30, [#allocation10], %s2004_s28, %s2004_s28, %s2005_s7  }
  0x72   : > { %s2006_s16 = smov [#allocation12]   ;;  %s2564_s8 = sld [smem:[#allocation29_spill]] }
  0x73   : > { %s364_s20 = sshll.u32 %s2006_s16, 4  ;;  %s365_s20 = int_to_ptr.vmem [resolvable:$true] %s364_s20 }
  0x78   : > { %s1811_s29 = scalar_lea.hbm %s2564_s8, 2048 }
  0x79   : > { %p1812_p4 = scmp.ne.s32.totalorder %s2564_s8, %s1811_s29  ;;  %p1818_p10 = scmp.lt.u32.totalorder %s1811_s29, %s2564_s8 }
  0x7b   : > { %p1814_p8 = pnand %p1812_p4, %p2147_p13 }
  0x7d   : > { %p1815_p6 = pneg %p1814_p8 }
  0x7f   : > { %p1820_p3 = pnand %p1818_p10, %p1815_p6 }
  0x81   : > { %1823 = shalt.err (!%p1820_p3)
}
  0x82   : > { %s1824_s30 = scalar_lea.vmem %s365_s20, 2048  ;;  %p1832_p12 = scmp.lt.s32.totalorder %s365_s20, %s365_s20 }
  0x83   : > { %p1825_p5 = scmp.ne.s32.totalorder %s365_s20, %s1824_s30  ;;  %p1833_p0 = scmp.lt.s32.totalorder %s1824_s30, %s1824_s30 }
  0x85   : > { %p1827_p7 = pnand %p1825_p5, %p2147_p13  ;;  %p1834_p1 = por %p1833_p0, %p1832_p12 }
  0x87   : > { %p1828_p9 = pneg %p1827_p7 }
  0x89   : > { %p1835_p2 = pnand %p1834_p1, %p1828_p9 }
  0x8b   : > { %1838 = shalt.err (!%p1835_p2)
}
  0x8c   : > { %1620 = dma.hbm_to_vmem [thread:$0]  (!%p2131_p11), %s2564_s8, 2048, %s365_s20, [#allocation13], %s2004_s28, %s2004_s28, %s2005_s7  }
  0x8d   : > { %s43_s13 = sadd.s32 1, %s1993_s17  ;;  %s52_s11 = sadd.s32 1, %s1985_s15 }
  0x8e   : > { %p45_p13 = scmp.ge.s32.totalorder %s43_s13, 2  ;;  %p59_p4 = scmp.ne.s32.totalorder %s1985_s15, %s1981_s14 }
  0x8f   : > { %p60_p8 = scmp.eq.s32.totalorder %s1997_s18, 0  ;;  %p1636_p6 = scmp.lt.s32.totalorder %s1997_s18, 2 }
  0x90   : > { %s2594_s13 = smov (%p45_p13, %s43_s13), 0  ;;  %p2565_p3 = scmp.eq.s32.totalorder %s2101_s19, 1 }
  0x91   : > { %p61_p10 = por %p60_p8, %p59_p4  ;;  %s47_s12 = ssub.s32 %s1993_s17, %s2594_s13 }
  0x92   : > { %p2244_p5 = por %p2565_p3, %p59_p4  ;;  %s381_s16 = sand.u32 1, %s1985_s15  }
  0x93   : > { %p50_p7 = scmp.eq.s32.totalorder %s47_s12, 0  ;;  %s2251_s28 = sshll.u32 %s381_s16, 5 }
  0x94   : > { %s1335_s7 = sshll.u32 %s1993_s17, 9  ;;  %s2567_s0 = sld [smem:[#allocation24_spill]] }
  0x95   : > { %s2255_s20 = scalar_select %p50_p7, %s1985_s15, %s52_s11  }
  0x96   : > { %s385_s22 = scalar_lea.vmem [#allocation3], %s2251_s28  ;;  %p2265_p11 = pnand %p1636_p6, %p61_p10 }
  0x97   : > { %s393_s25 = sshll.u32 %s385_s22, 4  ;;  %s2274_s11 = scalar_lea.hbm %s2525_s1, %s1335_s7  ;;  %s2269_s25 = int_to_ptr.vmem [resolvable:$true] %s393_s25 }
  0x98   : > { %s2276_s12 = scalar_lea.sflag [#allocation4], %s381_s16  ;;  %p1841_p12 = pneg %p2265_p11 }
  0x9a   : > { %s2260_s29 = scalar_lea.hbm %s2567_s0, %s1335_s7  ;;  %s1844_s2 = scalar_lea.hbm %s2567_s0, 1024 }
  0x9b   : > { %s1839_s24 = scalar_lea.hbm %s2260_s29, 512  ;;  %p1845_p2 = scmp.lt.u32.totalorder %s2260_s29, %s2567_s0 }
  0x9c   : > { %p1840_p9 = scmp.ne.s32.totalorder %s2260_s29, %s1839_s24  ;;  %p1846_p13 = scmp.lt.u32.totalorder %s1844_s2, %s1839_s24 }
  0x9d   : > { %p1848_p8 = scmp.lt.u32.totalorder %s1839_s24, %s2260_s29 }
  0x9e   : > { %p1842_p0 = pnand %p1841_p12, %p1840_p9  ;;  %p1847_p4 = por %p1846_p13, %p1845_p2 }
  0xa0   : > { %p1843_p1 = pneg %p1842_p0  ;;  %p1849_p6 = por %p1848_p8, %p1847_p4 }
  0xa2   : > { %p1850_p10 = pnand %p1849_p6, %p1843_p1 }
  0xa4   : > { %1853 = shalt.err (!%p1850_p10)
}
  0xa5   : > { %s1854_s16 = scalar_lea.vmem %s2269_s25, 512  ;;  %s2007_s7 = smov [#allocation3]  }
  0xa6   : > { %p1855_p3 = scmp.ne.s32.totalorder %s2269_s25, %s1854_s16  ;;  %s1859_s9 = sshll.u32 %s2007_s7, 4  ;;  %s1860_s9 = int_to_ptr.vmem [resolvable:$false] %s1859_s9 }
  0xa7   : > { %s1861_s4 = scalar_lea.vmem %s1860_s9, 1024  ;;  %p1862_p0 = scmp.lt.s32.totalorder %s2269_s25, %s1860_s9 }
  0xa8   : > { %p1857_p7 = pnand %p1855_p3, %p1841_p12  ;;  %p1863_p2 = scmp.lt.s32.totalorder %s1861_s4, %s1854_s16 }
  0xaa   : > { %p1858_p9 = pneg %p1857_p7  ;;  %p1864_p13 = por %p1863_p2, %p1862_p0 }
  0xac   : > { %p1865_p4 = pnand %p1864_p13, %p1858_p9 }
  0xae   : > { %1868 = shalt.err (!%p1865_p4)
}
  0xaf   : > { %s2569_s2 = smov 4   ;;  %s2570_s6 = smov 64  }
  0xb0   : > { %1624 = dma.hbm_to_vmem [thread:$0]  (!%p2265_p11), %s2260_s29, 512, %s2269_s25, %s2276_s12, %s2570_s6, %s2570_s6, %s2569_s2  }
  0xb1   : > { %s407_s10 = scalar_lea.vmem [#allocation6], %s2251_s28  ;;  %s403_s27 = sand.u32 1, %s1997_s18  }
  0xb2   : > { %s414_s24 = sshll.u32 %s407_s10, 4  ;;  %s2311_s22 = scalar_lea.sflag [#allocation7], %s403_s27  ;;  %s2309_s24 = int_to_ptr.vmem [resolvable:$true] %s414_s24 }
  0xb3   : > { %s1869_s16 = scalar_lea.hbm %s2274_s11, 512  ;;  %s1874_s4 = scalar_lea.hbm %s2525_s1, 1024 }
  0xb4   : > { %p1870_p1 = scmp.ne.s32.totalorder %s2274_s11, %s1869_s16  ;;  %p1875_p10 = scmp.lt.u32.totalorder %s2274_s11, %s2525_s1 }
  0xb5   : > { %p1876_p3 = scmp.lt.u32.totalorder %s1874_s4, %s1869_s16  ;;  %p1878_p9 = scmp.lt.u32.totalorder %s1869_s16, %s2274_s11 }
  0xb6   : > { %p1872_p8 = pnand %p1870_p1, %p1841_p12 }
  0xb7   : > { %p1877_p7 = por %p1876_p3, %p1875_p10 }
  0xb8   : > { %p1873_p6 = pneg %p1872_p8 }
  0xb9   : > { %p1879_p0 = por %p1878_p9, %p1877_p7 }
  0xbb   : > { %p1880_p2 = pnand %p1879_p0, %p1873_p6 }
  0xbd   : > { %1883 = shalt.err (!%p1880_p2)
}
  0xbe   : > { %s1884_s28 = scalar_lea.vmem %s2309_s24, 512  ;;  %s2008_s29 = smov [#allocation6]  }
  0xbf   : > { %p1885_p13 = scmp.ne.s32.totalorder %s2309_s24, %s1884_s28  ;;  %s1889_s25 = sshll.u32 %s2008_s29, 4  ;;  %s1890_s25 = int_to_ptr.vmem [resolvable:$false] %s1889_s25 }
  0xc0   : > { %s1891_s0 = scalar_lea.vmem %s1890_s25, 1024  ;;  %p1892_p8 = scmp.lt.s32.totalorder %s2309_s24, %s1890_s25 }
  0xc1   : > { %p1887_p4 = pnand %p1885_p13, %p1841_p12  ;;  %p1893_p10 = scmp.lt.s32.totalorder %s1891_s0, %s1884_s28 }
  0xc3   : > { %p1888_p1 = pneg %p1887_p4  ;;  %p1894_p3 = por %p1893_p10, %p1892_p8 }
  0xc5   : > { %p1895_p7 = pnand %p1894_p3, %p1888_p1 }
  0xc7   : > { %1898 = shalt.err (!%p1895_p7)
}
  0xc8   : > { %1627 = dma.hbm_to_vmem [thread:$0]  (!%p2265_p11), %s2274_s11, 512, %s2309_s24, %s2311_s22, %s2570_s6, %s2570_s6, %s2569_s2  }
  0xc9   : > { %p2571_p12 = scmp.ne.s32.totalorder %s2558_s23, 0 }
  0xca   : > { %s2343_s8 = sand.u32 (!%p2571_p12), 1, %s1981_s14   ;;  %p2572_p6 = scmp.ne.s32.totalorder (!%p2571_p12), %s2555_s21, 0 }
  0xcb   : > { %426 = sbr.rel (%p2571_p12) target bundleno = 996 (0x3e4), region = 60  ;;  %s1297_s12 = sshll.u32 (!%p2571_p12), %s2343_s8, 5 }
  0xcc   : > { %s429_s10 = scalar_lea.sflag (!%p2571_p12), [#allocation4], %s2343_s8  ;;  %s2347_s27 = scalar_lea.vmem (!%p2571_p12), [#allocation3], %s1297_s12 }
  0xd2   : > { %1952 = dma.done.wait (%p2572_p6), %s429_s10, 512  }
  0xd3   : > { %1954 = vsyncadd (%p2572_p6), %s429_s10, 4294966784  ;;  %s437_s30 = sand.u32 1, %s2101_s19   ;;  %s2354_s11 = scalar_lea.vmem [#allocation6], %s1297_s12 }
  0xd4   : > { %s438_s23 = scalar_lea.sflag [#allocation7], %s437_s30 }
  0xd5   : > { %1956 = dma.done.wait (%p2572_p6), %s438_s23, 512  }
  0xd6   : > { %1958 = vsyncadd (%p2572_p6), %s438_s23, 4294966784  ;;  %p2573_p11 = scmp.eq.s32.totalorder %s2101_s19, 0 }
  0xd8   : > { %1960 = dma.done.wait (%p2573_p11), [#allocation7], 1024   ;;  %p2574_p9 = pmov %p2573_p11 }
  0xda   : > { %1962 = vsyncadd (%p2574_p9), [#allocation7], 4294966272  ;;  %p2575_p0 = pmov %p2574_p9 }
  0xdc   : > { %1964 = dma.done.wait (%p2575_p0), [#allocation10], 3072   ;;  %p2576_p2 = pmov %p2575_p0 }
  0xdd   : > { %p2577_p13 = pmov %p2575_p0 }
  0xde   : > { %1966 = vsyncadd (%p2576_p2), [#allocation10], 4294964224 }
  0xdf   : > { %1968 = dma.done.wait (%p2577_p13), [#allocation13], 2048   ;;  %p2578_p4 = pmov %p2575_p0 }
  0xe0   : > { %v1703_v0 = vld [vmem:[#allocation8] sm:$0xff]   ;;  %v1704_v1 = vld [vmem:[#allocation8 + $0x8] sm:$0xff]   ;;  %v1705_v2 = vld [vmem:[#allocation8 + $0x10] sm:$0xff]   ;;  %v2009_v27 = vmov 0.0|0.0   ;;  %vm2010_vm0 = vmmov 0   ;;  %v2011_v45 = vmov 0.0  }
  0xe1   : > { %1970 = vsyncadd (%p2578_p4), [#allocation13], 4294965248  ;;  %1396 = vmatprep.subr.bf16.mxu0 %v1703_v0  ;;  %v1706_v3 = vld [vmem:[#allocation8 + $0x18] sm:$0xff]   ;;  %v1711_v4 = vld [vmem:[%s2347_s27] sm:$0xff]   ;;  %1514 = vmatprep.subr.bf16.mxu1 %v2009_v27  ;;  %s2579_s16 = sld [smem:[#allocation28_spill]]  ;;  %s2580_s7 = sld [smem:[#allocation22_spill]] }
  0xe2   : > { %1397 = vmatpush3.bf16.msra.mxu0 %v1703_v0  ;;  %1412 = vmatprep.mubr.bf16.mxu0 %v1711_v4  ;;  %v1707_v5 = vld [vmem:[#allocation8 + $0x20] sm:$0xff]   ;;  %v1708_v6 = vld [vmem:[#allocation8 + $0x28] sm:$0xff]   ;;  %v1709_v7 = vld [vmem:[#allocation8 + $0x30] sm:$0xff]   ;;  %s2581_s28 = sld [smem:[#allocation30_spill]]  ;;  %s1303_s29 = sshll.u32 %s2343_s8, 6 }
  0xe3   : > { %1398 = vmatprep.subr.bf16.mxu0 %v1704_v1  ;;  %v1710_v8 = vld [vmem:[#allocation8 + $0x38] sm:$0xff]   ;;  %v1712_v9 = vld [vmem:[#allocation9] sm:$0xff]   ;;  %v1713_v10 = vld [vmem:[%s2347_s27 + $0x8] sm:$0xff]   ;;  %1476 = vmatprep.mubr.msk.f32.mxu1 %vm2010_vm0, %v2011_v45  ;;  %s498_s0 = scalar_lea.vmem [#allocation14], %s1303_s29  ;;  %s2582_s30 = sld [smem:[#allocation31_spill]] }
  0xe4   : > { %v1719_v11 = vld [vmem:[%s2347_s27 + $0x10] sm:$0xff]   ;;  %v1714_v12 = vld [vmem:[#allocation9 + $0x8] sm:$0xff]   ;;  %v1720_v14 = vld [vmem:[%s2347_s27 + $0x18] sm:$0xff]   ;;  %s1136_s12 = sshll.u32 %s498_s0, 4  ;;  %s2012_s21 = smov [#allocation14]   ;;  %s2467_s12 = int_to_ptr.vmem [resolvable:$true] %s1136_s12 }
  0xe5   : > { %v1715_v13 = vld [vmem:[#allocation9 + $0x10] sm:$0xff]   ;;  %v1723_v15 = vld [vmem:[%s2354_s11] sm:$0xff]   ;;  %v1716_v16 = vld [vmem:[#allocation9 + $0x18] sm:$0xff]   ;;  %s1899_s19 = scalar_lea.vmem %s2467_s12, 1024  ;;  %s1903_s2 = sshll.u32 %s2012_s21, 4  ;;  %s1904_s2 = int_to_ptr.vmem [resolvable:$false] %s1903_s2 }
  0xe6   : > { %1399 = vmatpush3.bf16.msra.mxu0 %v1704_v1  ;;  %v1717_v17 = vld [vmem:[#allocation9 + $0x20] sm:$0xff]   ;;  %v1718_v18 = vld [vmem:[#allocation9 + $0x28] sm:$0xff]   ;;  %v1721_v19 = vld [vmem:[#allocation9 + $0x30] sm:$0xff]   ;;  %p1900_p1 = scmp.ne.s32.totalorder %s2467_s12, %s1899_s19  ;;  %s1905_s6 = scalar_lea.vmem %s1904_s2, 2048 }
  0xe7   : > { %1400 = vmatprep.subr.bf16.mxu0 %v1705_v2  ;;  %v1722_v20 = vld [vmem:[#allocation9 + $0x38] sm:$0xff]   ;;  %v1724_v21 = vld [vmem:[%s2354_s11 + $0x8] sm:$0xff]   ;;  %v1725_v22 = vld [vmem:[%s2354_s11 + $0x10] sm:$0xff]   ;;  %s1337_s25 = sshll.u32 %s2580_s7, 10  ;;  %p1906_p3 = scmp.lt.s32.totalorder %s2467_s12, %s1904_s2 }
  0xe8   : > { %v1726_v23 = vld [vmem:[%s2354_s11 + $0x18] sm:$0xff]   ;;  %v923_v24 = vld [vmem:[#allocation11] sm:$0xff]  ;;  %v924_v25 = vld [vmem:[#allocation11 + $0x8] sm:$0xff]  ;;  %s1123_s11 = scalar_lea.sflag [#allocation5], %s2343_s8  ;;  %p1901_p8 = pnand %p1900_p1, %p2244_p5 }
  0xe9   : > { %v1515_v26 = vpack.c.bf16 %v924_v25, %v923_v24  ;;  %v925_v28 = vld [vmem:[#allocation11 + $0x10] sm:$0xff]  ;;  %v926_v29 = vld [vmem:[#allocation11 + $0x18] sm:$0xff]  ;;  %v927_v31 = vld [vmem:[#allocation11 + $0x20] sm:$0xff]  ;;  %s2465_s23 = scalar_lea.hbm %s2582_s30, %s1337_s25  ;;  %p1907_p7 = scmp.lt.s32.totalorder %s1905_s6, %s1899_s19 }
  0xea   : > { %1401 = vmatpush3.bf16.msra.mxu0 %v1705_v2  ;;  %v1518_v30 = vpack.c.bf16 %v926_v29, %v925_v28  ;;  %v928_v32 = vld [vmem:[#allocation11 + $0x28] sm:$0xff]  ;;  %v929_v34 = vld [vmem:[#allocation11 + $0x30] sm:$0xff]  ;;  %v930_v35 = vld [vmem:[#allocation11 + $0x38] sm:$0xff]  ;;  %p1902_p10 = pneg %p1901_p8 }
  0xeb   : > { %1402 = vmatprep.subr.bf16.mxu0 %v1706_v3  ;;  %1516 = vmatpush3.bf16.msra.mxu1 %v1515_v26  ;;  %v1521_v33 = vpack.c.bf16 %v928_v32, %v927_v31  ;;  %v1524_v36 = vpack.c.bf16 %v930_v35, %v929_v34  ;;  %v931_v37 = vld [vmem:[#allocation11 + $0x40] sm:$0xff]  ;;  %v932_v38 = vld [vmem:[#allocation11 + $0x48] sm:$0xff]  ;;  %v933_v40 = vld [vmem:[#allocation11 + $0x50] sm:$0xff]  ;;  %p1908_p12 = por %p1907_p7, %p1906_p3 }
  0xec   : > { %1517 = vmatprep.subr.bf16.mxu1 %v2009_v27  ;;  %v1527_v39 = vpack.c.bf16 %v932_v38, %v931_v37  ;;  %v934_v41 = vld [vmem:[#allocation11 + $0x58] sm:$0xff]  ;;  %v935_v42 = vld [vmem:[#allocation11 + $0x60] sm:$0xff]  ;;  %v936_v44 = vld [vmem:[#allocation11 + $0x68] sm:$0xff] }
  0xed   : > { %v1530_v43 = vpack.c.bf16 %v934_v41, %v933_v40  ;;  %v1533_v46 = vpack.c.bf16 %v936_v44, %v935_v42  ;;  %v937_v47 = vld [vmem:[#allocation11 + $0x70] sm:$0xff]  ;;  %v938_v48 = vld [vmem:[#allocation11 + $0x78] sm:$0xff]  ;;  %v1316_v50 = vld [vmem:[%s2527_s3] ss:$0 sm:$0xff]  ;;  %p1909_p6 = pnand %p1908_p12, %p1902_p10 }
  0xee   : > { %1403 = vmatpush3.bf16.msra.mxu0 %v1706_v3  ;;  %v1536_v49 = vpack.c.bf16 %v938_v48, %v937_v47  ;;  %v1317_v51 = vld [vmem:[%s2529_s5] ss:$0 sm:$0xff]  ;;  %v1012_v29 = vld [vmem:[#allocation12 + $0x8] sm:$0xff]  ;;  %v1014_v34 = vld [vmem:[#allocation12 + $0x18] sm:$0xff] }
  0xef   : > { %1404 = vmatprep.subr.bf16.mxu0 %v1707_v5  ;;  %1519 = vmatpush3.bf16.msra.mxu1 %v1518_v30  ;;  %v1568_v53 = vadd.f32 %v1317_v51, %v1316_v50  ;;  %v1011_v28 = vld [vmem:[#allocation12] sm:$0xff]  ;;  %v1016_v37 = vld [vmem:[#allocation12 + $0x28] sm:$0xff]  ;;  %v1018_v40 = vld [vmem:[#allocation12 + $0x38] sm:$0xff] }
  0xf0   : > { %1520 = vmatprep.subr.bf16.mxu1 %v2009_v27  ;;  %v1539_v31 = vpack.c.bf16 %v1012_v29, %v1011_v28  ;;  %v1019_v42 = vld [vmem:[#allocation12 + $0x40] sm:$0xff] }
  0xf1   : > { %v1023_v48 = vld [vmem:[#allocation12 + $0x60] sm:$0xff] }
  0xf2   : > { %1405 = vmatpush3.bf16.msra.mxu0 %v1707_v5 }
  0xf3   : > { %1406 = vmatprep.subr.bf16.mxu0 %v1708_v6  ;;  %1522 = vmatpush3.bf16.msra.mxu1 %v1521_v33  ;;  %v1013_v33 = vld [vmem:[#allocation12 + $0x10] sm:$0xff] }
  0xf4   : > { %1523 = vmatprep.subr.bf16.mxu1 %v2009_v27  ;;  %v1542_v35 = vpack.c.bf16 %v1014_v34, %v1013_v33 }
  0xf6   : > { %1407 = vmatpush3.bf16.msra.mxu0 %v1708_v6 }
  0xf7   : > { %1408 = vmatprep.subr.bf16.mxu0 %v1709_v7  ;;  %1525 = vmatpush3.bf16.msra.mxu1 %v1524_v36  ;;  %v1015_v36 = vld [vmem:[#allocation12 + $0x20] sm:$0xff] }
  0xf8   : > { %1526 = vmatprep.subr.bf16.mxu1 %v2009_v27  ;;  %v1545_v38 = vpack.c.bf16 %v1016_v37, %v1015_v36 }
  0xfa   : > { %1409 = vmatpush3.bf16.msra.mxu0 %v1709_v7 }
  0xfb   : > { %1410 = vmatprep.subr.bf16.mxu0 %v1710_v8  ;;  %1528 = vmatpush3.bf16.msra.mxu1 %v1527_v39  ;;  %v1017_v39 = vld [vmem:[#allocation12 + $0x30] sm:$0xff] }
  0xfc   : > { %1529 = vmatprep.subr.bf16.mxu1 %v2009_v27  ;;  %v1548_v41 = vpack.c.bf16 %v1018_v40, %v1017_v39 }
  0xfe   : > { %1411 = vmatpush3.bf16.msra.mxu0 %v1710_v8 }
  0xff   : > { %1420 = vmatprep.subr.bf16.mxu0 %v1712_v9  ;;  %1531 = vmatpush3.bf16.msra.mxu1 %v1530_v43  ;;  %v1020_v43 = vld [vmem:[#allocation12 + $0x48] sm:$0xff] }
 0x100   : > { %1532 = vmatprep.subr.bf16.mxu1 %v2009_v27  ;;  %v1551_v44 = vpack.c.bf16 %v1020_v43, %v1019_v42 }
 0x101   : > { %1413 = vmatmul.mubr.bf16.vlgmr.msra.gmra.mrb[0].mxu0 %v1713_v10 }
 0x102   : > { %1421 = vmatpush3.bf16.msra.mxu0 %v1712_v9  ;;  %1416 = vmatprep.mubr.bf16.mxu0 %v1719_v11 }
 0x103   : > { %1422 = vmatprep.subr.bf16.mxu0 %v1714_v12  ;;  %1534 = vmatpush3.bf16.msra.mxu1 %v1533_v46  ;;  %v1022_v46 = vld [vmem:[#allocation12 + $0x58] sm:$0xff] }
 0x104   : > { %1535 = vmatprep.subr.bf16.mxu1 %v2009_v27 }
 0x106   : > { %1423 = vmatpush3.bf16.msra.mxu0 %v1714_v12 }
 0x107   : > { %1424 = vmatprep.subr.bf16.mxu0 %v1715_v13  ;;  %1537 = vmatpush3.bf16.msra.mxu1 %v1536_v49  ;;  %v1024_v49 = vld [vmem:[#allocation12 + $0x68] sm:$0xff] }
 0x108   : > { %1538 = vmatprep.subr.bf16.mxu1 %v2009_v27 }
 0x109   : > { %1417 = vmatmul.mubr.bf16.gmra.mrb[4].mxu0 %v1720_v14 }
 0x10a   : > { %1425 = vmatpush3.bf16.msra.mxu0 %v1715_v13  ;;  %1436 = vmatprep.mubr.bf16.mxu0 %v1723_v15 }
 0x10b   : > { %1426 = vmatprep.subr.bf16.mxu0 %v1716_v16 }
 0x10e   : > { %1427 = vmatpush3.bf16.msra.mxu0 %v1716_v16 }
 0x10f   : > { %1428 = vmatprep.subr.bf16.mxu0 %v1717_v17 }
 0x112   : > { %1429 = vmatpush3.bf16.msra.mxu0 %v1717_v17 }
 0x113   : > { %1430 = vmatprep.subr.bf16.mxu0 %v1718_v18 }
 0x116   : > { %1431 = vmatpush3.bf16.msra.mxu0 %v1718_v18 }
 0x117   : > { %1432 = vmatprep.subr.bf16.mxu0 %v1721_v19 }
 0x11a   : > { %1433 = vmatpush3.bf16.msra.mxu0 %v1721_v19 }
 0x11b   : > { %1434 = vmatprep.subr.bf16.mxu0 %v1722_v20 }
 0x11e   : > { %1435 = vmatpush3.bf16.msra.mxu0 %v1722_v20 }
 0x121   : > { %1437 = vmatmul.mubr.bf16.vlgmr.msra.gmra.mrb[0].mxu0 %v1724_v21 }
 0x122   : > { %1440 = vmatprep.mubr.bf16.mxu0 %v1725_v22 }
 0x129   : > { %1441 = vmatmul.mubr.bf16.gmra.mrb[4].mxu0 %v1726_v23 }
 0x1f4   : > { %v1438_v52 = vpop.f32.mrb[0].mxu0 }
 0x1f5   : > { %v1562_v54 = vadd.f32 %v1438_v52, %v1316_v50  ;;  %v861_v55 = vpop.f32.mrb[1].mxu0  ;;  %v1026_v52 = vld [vmem:[#allocation12 + $0x78] sm:$0xff] }
 0x1f6   : > { %v1564_v56 = vadd.f32 %v1316_v50, %v861_v55  ;;  %v1439_v57 = vpop.f32.mrb[2].mxu0  ;;  %v1557_v50 = vpack.c.bf16 %v1024_v49, %v1023_v48 }
 0x1f7   : > { %v864_v58 = vpop.f32.mrb[3].mxu0  ;;  %v2397_v59 = vadd.f32 %v1562_v54, %v1317_v51  ;;  %v2404_v63 = vadd.f32 %v1568_v53, %v1439_v57  ;;  %v939_v54 = vld [vmem:[%s2579_s16] sm:$0x1] }
 0x1f8   : > { %v2399_v60 = vadd.f32 %v1564_v56, %v1317_v51  ;;  %v2401_v61 = vadd.f32 %v1568_v53, %v864_v58  ;;  %v1025_v51 = vld [vmem:[#allocation12 + $0x70] sm:$0xff] }
 0x1f9   : > { %v902_v1 = vmax.f32 %v2397_v59, 0.0  ;;  %v903_v5 = vmax.f32 %v2404_v63, 0.0 }
 0x1fa   : > { %v900_v62 = vmax.f32 %v2399_v60, 0.0  ;;  %v901_v0 = vmax.f32 %v2401_v61, 0.0 }
 0x1fc   : > { %v908_v2 = vadd.f32 %v901_v0, %v900_v62  ;;  %v1442_v3 = vpop.f32.mrb[4].mxu0 }
 0x1fd   : > { %v877_v4 = vpop.f32.mrb[5].mxu0  ;;  %v2417_v10 = vadd.f32 %v1568_v53, %v1442_v3 }
 0x1fe   : > { %v909_v6 = vadd.f32 %v908_v2, %v902_v1  ;;  %v2415_v7 = vadd.f32 %v1568_v53, %v877_v4  ;;  %v1443_v8 = vpop.f32.mrb[6].mxu0  ;;  %v1027_v2 = vld [vmem:[%s2581_s28] sm:$0x1] }
 0x1ff   : > { %v880_v9 = vpop.f32.mrb[7].mxu0  ;;  %v2426_v15 = vadd.f32 %v1568_v53, %v1443_v8  ;;  %v906_v17 = vmax.f32 %v2417_v10, 0.0 }
 0x200   : > { %v904_v11 = vmax.f32 %v2415_v7, 0.0  ;;  %v910_v12 = vadd.f32 %v909_v6, %v903_v5  ;;  %v2422_v13 = vadd.f32 %v1568_v53, %v880_v9  ;;  %v1560_v53 = vpack.c.bf16 %v1026_v52, %v1025_v51 }
 0x201   : > { %v907_v19 = vmax.f32 %v2426_v15, 0.0 }
 0x202   : > { %v911_v14 = vadd.f32 %v910_v12, %v904_v11  ;;  %v905_v16 = vmax.f32 %v2422_v13, 0.0 }
 0x204   : > { %v912_v18 = vadd.f32 %v911_v14, %v905_v16 }
 0x206   : > { %v913_v20 = vadd.f32 %v912_v18, %v906_v17 }
 0x208   : > { %v914_v21 = vadd.f32 %v913_v20, %v907_v19 }
 0x20a   : > { %v915_v22 = vrot.slane %v914_v21, 4 }
 0x20c   : > { %v916_v23 = vadd.f32 %v915_v22, %v914_v21 }
 0x20e   : > { %v917_v24 = vrot.slane %v916_v23, 2 }
 0x210   : > { %v918_v25 = vadd.f32 %v917_v24, %v916_v23 }
 0x212   : > { %v919_v26 = vrot.slane %v918_v25, 1 }
 0x214   : > { %v920_v30 = vadd.f32 %v919_v26, %v918_v25 }
 0x216   : > { %v922_v32 = vmul.f32 0.015625, %v920_v30 }
 0x218   : > { %1477 = vmatmul.mubr.f32.vlgmr.msra.gmra.mrb[0].mxu1 %v922_v32 }
 0x219   : > { %1540 = vmatpush3.bf16.msra.mxu1 %v1539_v31  ;;  %1511 = vmatprep.mubr.msk.f32.mxu1 %vm2010_vm0, %v2011_v45  ;;  %v1021_v45 = vld [vmem:[#allocation12 + $0x50] sm:$0xff] }
 0x21a   : > { %1541 = vmatprep.subr.bf16.mxu1 %v2009_v27  ;;  %v1554_v47 = vpack.c.bf16 %v1022_v46, %v1021_v45 }
 0x21d   : > { %1543 = vmatpush3.bf16.msra.mxu1 %v1542_v35 }
 0x21e   : > { %1544 = vmatprep.subr.bf16.mxu1 %v2009_v27 }
 0x221   : > { %1546 = vmatpush3.bf16.msra.mxu1 %v1545_v38 }
 0x222   : > { %1547 = vmatprep.subr.bf16.mxu1 %v2009_v27 }
 0x225   : > { %1549 = vmatpush3.bf16.msra.mxu1 %v1548_v41 }
 0x226   : > { %1550 = vmatprep.subr.bf16.mxu1 %v2009_v27 }
 0x229   : > { %1552 = vmatpush3.bf16.msra.mxu1 %v1551_v44 }
 0x22a   : > { %1553 = vmatprep.subr.bf16.mxu1 %v2009_v27 }
 0x22d   : > { %1555 = vmatpush3.bf16.msra.mxu1 %v1554_v47 }
 0x22e   : > { %1556 = vmatprep.subr.bf16.mxu1 %v2009_v27 }
 0x231   : > { %1558 = vmatpush3.bf16.msra.mxu1 %v1557_v50 }
 0x232   : > { %1559 = vmatprep.subr.bf16.mxu1 %v2009_v27  ;;  %v1102_v27 = vlaneseq }
 0x234   : > { %v1103_v9 = vshrl.u32 %v1102_v27, 7 }
 0x235   : > { %1561 = vmatpush3.bf16.msra.mxu1 %v1560_v53 }
 0x236   : > { %v1104_v18 = vsub.s32 0, %v1103_v9 }
 0x2eb   : > { %v1006_v55 = vpop.f32.mrb[0].mxu1 }
 0x2ec   : > { %v1007_v56 = vadd.f32 %v1006_v55, %v939_v54  ;;  %v1478_v57 = vpop.f32.mrb[1].mxu1 }
 0x2ee   : > { %v1010_v58 = vmax.f32 %v1007_v56, 0.0 }
 0x2f0   : > { %1512 = vmatmul.mubr.f32.vlgmr.msra.gmra.mrb[2].mxu1 %v1010_v58 }
 0x3c3   : > { %v1094_v3 = vpop.f32.mrb[2].mxu1 }
 0x3c4   : > { %v1095_v4 = vadd.f32 %v1094_v3, %v1027_v2  ;;  %v1513_v6 = vpop.f32.mrb[3].mxu1 }
 0x3c6   : > { %v1098_v8 = vadd.f32 3.0, %v1095_v4 }
 0x3c8   : > { %v1099_v12 = vmax.f32 %v1098_v8, 0.0 }
 0x3ca   : > { %v1100_v14 = vmin.f32 %v1099_v12, 6.0 }
 0x3cc   : > { %v1101_v20 = vmul.f32 0.16666667, %v1100_v14 }
 0x3ce   : > { %v1105_v21 = vrot.slane %v1101_v20, %v1104_v18 }
 0x3d0   : > { %v1106_v22 = vmul.f32 %v1105_v21, %v900_v62  ;;  %v1107_v23 = vmul.f32 %v1105_v21, %v901_v0  ;;  %v1108_v24 = vmul.f32 %v1105_v21, %v902_v1  ;;  %v1109_v25 = vmul.f32 %v1105_v21, %v903_v5 }
 0x3d1   : > { %v1110_v60 = vmul.f32 %v1105_v21, %v904_v11  ;;  %v1111_v59 = vmul.f32 %v1105_v21, %v905_v16  ;;  %v1112_v61 = vmul.f32 %v1105_v21, %v906_v17  ;;  %v1113_v62 = vmul.f32 %v1105_v21, %v907_v19 }
 0x3d2   : > { %1114 = vst [vmem:[%s498_s0] sm:$0xff] %v1106_v22  ;;  %1115 = vst [vmem:[%s498_s0 + $0x8] sm:$0xff] %v1107_v23 }
 0x3d3   : > { %1116 = vst [vmem:[%s498_s0 + $0x10] sm:$0xff] %v1108_v24  ;;  %1117 = vst [vmem:[%s498_s0 + $0x18] sm:$0xff] %v1109_v25 }
 0x3d4   : > { %1118 = vst [vmem:[%s498_s0 + $0x20] sm:$0xff] %v1110_v60  ;;  %1119 = vst [vmem:[%s498_s0 + $0x28] sm:$0xff] %v1111_v59 }
 0x3d5   : > { %1120 = vst [vmem:[%s498_s0 + $0x30] sm:$0xff] %v1112_v61  ;;  %1121 = vst [vmem:[%s498_s0 + $0x38] sm:$0xff] %v1113_v62 }
 0x3d6   : > { %1912 = shalt.err (!%p1909_p6)
}
 0x3d7   : > { %s1913_s24 = scalar_lea.hbm %s2465_s23, 1024  ;;  %s1917_s7 = scalar_lea.hbm %s2582_s30, 2048 }
 0x3d8   : > { %p1914_p11 = scmp.ne.s32.totalorder %s2465_s23, %s1913_s24  ;;  %p1918_p2 = scmp.lt.u32.totalorder %s2465_s23, %s2582_s30 }
 0x3d9   : > { %p1919_p13 = scmp.lt.u32.totalorder %s1917_s7, %s1913_s24  ;;  %p1921_p1 = scmp.lt.u32.totalorder %s1913_s24, %s2465_s23 }
 0x3da   : > { %p1915_p9 = pnand %p1914_p11, %p2244_p5 }
 0x3db   : > { %p1920_p4 = por %p1919_p13, %p1918_p2 }
 0x3dc   : > { %p1916_p0 = pneg %p1915_p9 }
 0x3dd   : > { %p1922_p8 = por %p1921_p1, %p1920_p4 }
 0x3df   : > { %p1923_p10 = pnand %p1922_p8, %p1916_p0 }
 0x3e1   : > { %1926 = shalt.err (!%p1923_p10)
}
 0x3e2   : > { %s2013_s28 = smov 128   ;;  %s2014_s29 = smov 8  }
 0x3e3   : > { %1606 = dma.vmem_to_hbm [thread:$0]  (%p2244_p5), %s2467_s12, 1024, %s2465_s23, %s1123_s11, %s2013_s28, %s2013_s28, %s2014_s29  }
 0x3e4 PF: > { %s2583_s25 = sld [smem:[#allocation21_spill]]  ;;  %s2584_s0 = sld [smem:[#allocation23_spill]] }
 0x3e5   : > { %p2586_p7 = scmp.ge.s32.totalorder %s1997_s18, 2 }
 0x3ea   : > { %s1151_s10 = sand.u32 1, %s2583_s25   ;;  %p2585_p3 = scmp.ne.s32.totalorder %s2584_s0, 0 }
 0x3eb   : > { %s1152_s27 = scalar_lea.sflag [#allocation5], %s1151_s10 }
 0x3ec   : > { %p1629_p12 = pnand %p2586_p7, %p2585_p3 }
 0x3ee   : > { %1972 = dma.done.wait (!%p1629_p12), %s1152_s27, 1024  }
 0x3ef   : > { %1974 = vsyncadd (!%p1629_p12), %s1152_s27, 4294966272  ;;  %s31_s18 = sadd.s32 1, %s1997_s18   ;;  %s2587_s26 = smov %s2594_s13 }
 0x3f0   : > { %p28_p6 = scmp.ge.s32.totalorder %s31_s18, 4   ;;  %s2588_s13 = smov %s1981_s14 }
 0x3f1   : > { %s2589_s14 = smov %s1985_s15  ;;  %s2590_s15 = smov %s2255_s20 }
 0x3f2   : > { %s2591_s16 = smov %s1993_s17  ;;  %s2592_s17 = smov %s2587_s26 }
 0x3f3   :  { %30 = sbr.rel (!%p28_p6) target bundleno = 19 (0x13), region = 143 }
 0x3fa   :  { %1157 = vsyncpa [#allocation4], 1 }
 0x3fb   :  { %1159 = vsyncpa [#allocation4 + $0x1], 1 }
 0x3fc   :  { %1160 = vsyncpa [#allocation7], 1 }
 0x3fd   :  { %1162 = vsyncpa [#allocation7 + $0x1], 1 }
 0x3fe   :  { %1163 = vsyncpa [#allocation10], 1 }
 0x3ff   :  { %1164 = vsyncpa [#allocation13], 1 }
 0x400   :  { %1165 = vsyncpa [#allocation5], 1 }
 0x401   :  { %1167 = vsyncpa [#allocation5 + $0x1], 1 }

</bundles_post_ra>
